<compile_context>
chip_gen: v7x
topology: tpu7x:2x2x1
jax: 0.10.0
libtpu: 0.0.40
codegen_flags: <defaults>
</compile_context>

<pallas_src>
import functools

import jax
import jax.numpy as jnp
from jax.experimental import pallas as pl
from jax.experimental.pallas import tpu as pltpu


LANE = 128           # output feature dim padded to a multiple of 128 lanes
DEFAULT_TM = 1024    # batch tile (rows) for large batches


def _round_up(n, m):
    return ((n + m - 1) // m) * m


def cat_actor_kernel(x_ref, w1_ref, b1_ref, w2_ref, b2_ref, o_ref):
    # In-kernel cast of the streamed x tile (f32 in HBM -> bf16 for the MXU).
    x = x_ref[...].astype(jnp.bfloat16)
    # fc1: (TM, In)bf16 @ (In, H)bf16 -> f32 accumulate; bias + tanh in f32.
    h = jnp.dot(x, w1_ref[...], preferred_element_type=jnp.float32)
    h = jnp.tanh(h + b1_ref[...])
    # fc2: (TM, H)bf16 @ (H, OutPad)bf16 -> f32 accumulate; bias in f32.
    out = jnp.dot(h.astype(jnp.bfloat16), w2_ref[...],
                  preferred_element_type=jnp.float32)
    out = out + b2_ref[...]
    # bf16, 128-lane-dense store: halves the dominant HBM writeback stream.
    o_ref[...] = out.astype(o_ref.dtype)


@functools.partial(jax.jit, static_argnames=("block_m",))
def cat_actor_forward(x, w1, b1, w2, b2, *, block_m=DEFAULT_TM):
    """x: (B, input_size) f32; w1: (input_size, H) f32; b1: (1, H) f32;
       w2: (H, output_size) f32; b2: (1, output_size) f32.
       Returns (B, output_size) f32 logits (== tanh(x@w1+b1)@w2+b2)."""
    B, input_size = x.shape
    hidden = w1.shape[1]
    out_size = w2.shape[1]

    # ---- batch tile selection ----
    # Small B: single tile rounded to the 16-row sublane packing (bf16 output).
    # Larger B: big tiles (amortize ~0.35us/grid-step) but keep grid_m >= 2 so
    # the "parallel" axis can shard across v7x's 2 TensorCores.
    if B <= 256:
        tm = _round_up(max(B, 1), 16)
    else:
        tm = min(block_m, _round_up((B + 1) // 2, 256))
    grid_m = pl.cdiv(B, tm)   # ragged last block: OOB rows masked at store

    # ---- pad output features to a lane-dense width (zeros contribute nothing) ----
    out_pad = _round_up(out_size, LANE)

    # Weight/bias prep: tiny one-off passes, fine to keep in the wrapper.
    w1b = w1.astype(jnp.bfloat16)
    w2b = jnp.pad(w2, ((0, 0), (0, out_pad - out_size))).astype(jnp.bfloat16)
    b2p = jnp.pad(b2, ((0, 0), (0, out_pad - out_size)))   # biases stay f32

    out_padded = pl.pallas_call(
        cat_actor_kernel,
        out_shape=jax.ShapeDtypeStruct((B, out_pad), jnp.bfloat16),
        grid_spec=pltpu.PrefetchScalarGridSpec(
            num_scalar_prefetch=0,
            grid=(grid_m,),
            in_specs=[
                pl.BlockSpec((tm, input_size), lambda i: (i, 0)),      # x tile (f32)
                pl.BlockSpec((input_size, hidden), lambda i: (0, 0)),  # w1 resident
                pl.BlockSpec((1, hidden), lambda i: (0, 0)),           # b1 resident
                pl.BlockSpec((hidden, out_pad), lambda i: (0, 0)),     # w2 resident
                pl.BlockSpec((1, out_pad), lambda i: (0, 0)),          # b2 resident
            ],
            out_specs=pl.BlockSpec((tm, out_pad), lambda i: (i, 0)),
        ),
        compiler_params=pltpu.CompilerParams(
            dimension_semantics=("parallel",),   # v7x: shard batch tiles over 2 TCs
        ),
    )(x, w1b, b1, w2b, b2p)

    # Slice off lane padding and restore f32 logits (matches PyTorch forward dtype).
    return out_padded[:, :out_size].astype(jnp.float32)


def init_cat_actor_params(key, input_size, output_size, hidden_size=128):
    """Deterministic init mimicking nn.Linear's U(-1/sqrt(fan_in), 1/sqrt(fan_in))."""
    k1, k2, k3, k4 = jax.random.split(key, 4)
    bound1 = 1.0 / jnp.sqrt(jnp.float32(input_size))
    bound2 = 1.0 / jnp.sqrt(jnp.float32(hidden_size))
    # Stored as (in, out): transpose of PyTorch's (out, in) weight layout.
    w1 = jax.random.uniform(k1, (input_size, hidden_size), jnp.float32, -bound1, bound1)
    b1 = jax.random.uniform(k2, (1, hidden_size), jnp.float32, -bound1, bound1)
    w2 = jax.random.uniform(k3, (hidden_size, output_size), jnp.float32, -bound2, bound2)
    b2 = jax.random.uniform(k4, (1, output_size), jnp.float32, -bound2, bound2)
    return w1, b1, w2, b2


def reference_forward(x, w1, b1, w2, b2):
    return jnp.tanh(x @ w1 + b1) @ w2 + b2


if __name__ == "__main__":
    key = jax.random.PRNGKey(0)
    batch = 2
    input_size = 32
    hidden_size = 128
    output_size = 8

    kx, kp = jax.random.split(key)
    x = jax.random.normal(kx, (batch, input_size), jnp.float32)
    w1, b1, w2, b2 = init_cat_actor_params(kp, input_size, output_size, hidden_size)

    out = cat_actor_forward(x, w1, b1, w2, b2)
    out = jax.block_until_ready(out)

    ref = reference_forward(x, w1, b1, w2, b2)
    assert out.shape == (batch, output_size)
    # bf16 matmul operands + bf16 output store with f32 accumulation:
    # loosen tolerance vs the pure-f32 reference.
    assert jnp.allclose(out, ref, atol=5e-2, rtol=5e-2), "mismatch vs reference"

    # Larger batch exercising the multi-tile grid AND the ragged last block
    # (B=600, tm=512 -> 2 grid steps, second block partially masked).
    big_b = 600
    xb = jax.random.normal(jax.random.PRNGKey(1), (big_b, input_size), jnp.float32)
    out_big = jax.block_until_ready(cat_actor_forward(xb, w1, b1, w2, b2))
    ref_big = reference_forward(xb, w1, b1, w2, b2)
    assert out_big.shape == (big_b, output_size)
    assert jnp.allclose(out_big, ref_big, atol=5e-2, rtol=5e-2), "mismatch (big batch)"

    # TODO(synk): choose_action's softmax + Categorical sampling is host-side
    # policy logic, intentionally left outside the kernel (forward pass only).
    print("KERNEL_OK")
</pallas_src>

<mosaic_0001>
module attributes {stable_mosaic.version = 11 : i64} {
  func.func @cat_actor_kernel(%arg0: i32, %arg1: memref<16x32xf32, #tpu.memory_space<vmem>>, %arg2: memref<32x128xbf16, #tpu.memory_space<vmem>>, %arg3: memref<1x128xf32, #tpu.memory_space<vmem>>, %arg4: memref<128x128xbf16, #tpu.memory_space<vmem>>, %arg5: memref<1x128xf32, #tpu.memory_space<vmem>>, %arg6: memref<16x128xbf16, #tpu.memory_space<vmem>>) attributes {dimension_semantics = [#tpu.dimension_semantics<parallel>], iteration_bounds = array<i64: 1>, scalar_prefetch = 0 : i64, scratch_operands = 0 : i64, tpu.core_type = #tpu.core_type<tc>, window_params = [{transform_indices = @transform_0, window_bounds = array<i64: 16, 32>}, {pipeline_mode = #tpu.pipeline_mode<synchronous>, transform_indices = @transform_1, window_bounds = array<i64: 32, 128>}, {pipeline_mode = #tpu.pipeline_mode<synchronous>, transform_indices = @transform_2, window_bounds = array<i64: 1, 128>}, {pipeline_mode = #tpu.pipeline_mode<synchronous>, transform_indices = @transform_3, window_bounds = array<i64: 128, 128>}, {pipeline_mode = #tpu.pipeline_mode<synchronous>, transform_indices = @transform_4, window_bounds = array<i64: 1, 128>}, {transform_indices = @transform_5, window_bounds = array<i64: 16, 128>}]} {
    %c0 = arith.constant 0 : index
    %c0_0 = arith.constant 0 : index
    %0 = vector.load %arg1[%c0, %c0_0] : memref<16x32xf32, #tpu.memory_space<vmem>>, vector<16x32xf32>
    %1 = arith.truncf %0 : vector<16x32xf32> to vector<16x32xbf16>
    %c0_1 = arith.constant 0 : index
    %c0_2 = arith.constant 0 : index
    %2 = vector.load %arg2[%c0_1, %c0_2] : memref<32x128xbf16, #tpu.memory_space<vmem>>, vector<32x128xbf16>
    %cst = arith.constant dense<0.000000e+00> : vector<16x128xf32>
    %3 = tpu.matmul %1, %2, %cst {dimension_numbers = #tpu.dot_dimension_numbers<[1], [0], [0], [1], [0, 0, 1, 1], [], []>} : vector<16x32xbf16>, vector<32x128xbf16>, vector<16x128xf32> -> vector<16x128xf32>
    %c0_3 = arith.constant 0 : index
    %c0_4 = arith.constant 0 : index
    %4 = vector.load %arg3[%c0_3, %c0_4] : memref<1x128xf32, #tpu.memory_space<vmem>>, vector<1x128xf32>
    %5 = vector.broadcast %4 : vector<1x128xf32> to vector<16x128xf32>
    %6 = arith.addf %3, %5 : vector<16x128xf32>
    %7 = math.tanh %6 : vector<16x128xf32>
    %8 = arith.truncf %7 : vector<16x128xf32> to vector<16x128xbf16>
    %c0_5 = arith.constant 0 : index
    %c0_6 = arith.constant 0 : index
    %9 = vector.load %arg4[%c0_5, %c0_6] : memref<128x128xbf16, #tpu.memory_space<vmem>>, vector<128x128xbf16>
    %cst_7 = arith.constant dense<0.000000e+00> : vector<16x128xf32>
    %10 = tpu.matmul %8, %9, %cst_7 {dimension_numbers = #tpu.dot_dimension_numbers<[1], [0], [0], [1], [0, 0, 1, 1], [], []>} : vector<16x128xbf16>, vector<128x128xbf16>, vector<16x128xf32> -> vector<16x128xf32>
    %c0_8 = arith.constant 0 : index
    %c0_9 = arith.constant 0 : index
    %11 = vector.load %arg5[%c0_8, %c0_9] : memref<1x128xf32, #tpu.memory_space<vmem>>, vector<1x128xf32>
    %12 = vector.broadcast %11 : vector<1x128xf32> to vector<16x128xf32>
    %13 = arith.addf %10, %12 : vector<16x128xf32>
    %14 = arith.truncf %13 : vector<16x128xf32> to vector<16x128xbf16>
    %c0_10 = arith.constant 0 : index
    %c0_11 = arith.constant 0 : index
    %15 = vector.load %arg6[%c0_10, %c0_11] : memref<16x128xbf16, #tpu.memory_space<vmem>>, vector<16x128xbf16>
    tpu.vector_store %arg6[%c0_10, %c0_11], %14 {strides = array<i32>} : memref<16x128xbf16, #tpu.memory_space<vmem>>, vector<16x128xbf16>,
    return
  }
  func.func @transform_0(%arg0: i32) -> (i32, i32) {
    %c0_i32 = arith.constant 0 : i32
    %c0_i32_0 = arith.constant 0 : i32
    return %arg0, %c0_i32 : i32, i32
  }
  func.func @transform_1(%arg0: i32) -> (i32, i32) {
    %c0_i32 = arith.constant 0 : i32
    %c0_i32_0 = arith.constant 0 : i32
    %c0_i32_1 = arith.constant 0 : i32
    return %c0_i32, %c0_i32_0 : i32, i32
  }
  func.func @transform_2(%arg0: i32) -> (i32, i32) {
    %c0_i32 = arith.constant 0 : i32
    %c0_i32_0 = arith.constant 0 : i32
    %c0_i32_1 = arith.constant 0 : i32
    return %c0_i32, %c0_i32_0 : i32, i32
  }
  func.func @transform_3(%arg0: i32) -> (i32, i32) {
    %c0_i32 = arith.constant 0 : i32
    %c0_i32_0 = arith.constant 0 : i32
    %c0_i32_1 = arith.constant 0 : i32
    return %c0_i32, %c0_i32_0 : i32, i32
  }
  func.func @transform_4(%arg0: i32) -> (i32, i32) {
    %c0_i32 = arith.constant 0 : i32
    %c0_i32_0 = arith.constant 0 : i32
    %c0_i32_1 = arith.constant 0 : i32
    return %c0_i32, %c0_i32_0 : i32, i32
  }
  func.func @transform_5(%arg0: i32) -> (i32, i32) {
    %c0_i32 = arith.constant 0 : i32
    %c0_i32_0 = arith.constant 0 : i32
    return %arg0, %c0_i32 : i32, i32
  }
}

</mosaic_0001>

<bundles_post_ra>
// kernel: cat_actor_forward.1
= control target key start
LH: loop header
LB: loop body
LE: loop exit
PB: predicated region body
PF: predicated region fallthrough
CT: control target
= control target key end

     0   :  { %v388_v1 = vmov 0.0   ;;  %vm389_vm0 = vmmov 0   ;;  %vm47_vm1 = vcmask 261120   ;;  %v390_v24 = vmov 1966171168   ;;  %s466_s0 = inlined_call_operand.vmem [shape: f32[2,32], index: 0, kind: input, shape index: {}]   ;;  %s467_s1 = inlined_call_operand.vmem [shape: bf16[32,128], index: 1, kind: input, shape index: {}]   ;;  %s468_s2 = inlined_call_operand.vmem [shape: f32[1,128], index: 2, kind: input, shape index: {}]   ;;  %s469_s3 = inlined_call_operand.vmem [shape: bf16[128,128], index: 3, kind: input, shape index: {}]   ;;  %s470_s4 = inlined_call_operand.vmem [shape: f32[1,128], index: 4, kind: input, shape index: {}]   ;;  %s471_s5 = inlined_call_operand.vmem [shape: bf16[2,128], index: 5, kind: output, shape index: {}]  }
   0x1   :  { %v374_v0 = vld [vmem:[%s467_s1] sm:$0xff]   ;;  %343 = vmatprep.subr.bf16.mxu0 %v388_v1  ;;  %v375_v2 = vld [vmem:[%s467_s1 + $0x8] sm:$0xff]   ;;  %351 = vmatprep.subr.bf16.mxu1 %v388_v1  ;;  %v378_v8 = vld [vmem:[%s469_s3 + $0x10] sm:$0xff]   ;;  %v211_v25 = vunpack.c.l.s4 %v390_v24  ;;  %v213_v26 = vlaneseq }
   0x2   :  { %344 = vmatpush3.bf16.msra.mxu0 %v374_v0  ;;  %347 = vmatprep.mubr.msk.bf16.mxu0 %vm389_vm0, %v388_v1  ;;  %v21_v3 = vld [vmem:[%s466_s0] sm:$0xff]  ;;  %v22_v4 = vld [vmem:[%s466_s0 + $0x8] sm:$0xff]  ;;  %v379_v9 = vld [vmem:[%s469_s3 + $0x18] sm:$0xff]  }
   0x3   :  { %345 = vmatprep.subr.bf16.mxu0 %v388_v1  ;;  %v376_v5 = vld [vmem:[%s469_s3] sm:$0xff]   ;;  %367 = vmatprep.mubr.msk.bf16.mxu1 %vm389_vm0, %v388_v1  ;;  %v23_v6 = vpack.c.bf16 %v22_v4, %v21_v3  ;;  %v377_v7 = vld [vmem:[%s469_s3 + $0x8] sm:$0xff]   ;;  %v382_v12 = vld [vmem:[%s469_s3 + $0x30] sm:$0xff]   ;;  %v212_v27 = vunpack.c.0.s8 %v211_v25  ;;  %v214_v28 = vshrl.u32 %v213_v26, 7 }
   0x4   :  { %352 = vmatpush3.bf16.msra.mxu1 %v376_v5  ;;  %v380_v10 = vld [vmem:[%s469_s3 + $0x20] sm:$0xff]   ;;  %v381_v11 = vld [vmem:[%s469_s3 + $0x28] sm:$0xff]   ;;  %v383_v13 = vld [vmem:[%s469_s3 + $0x38] sm:$0xff]  }
   0x5   :  { %353 = vmatprep.subr.bf16.mxu1 %v388_v1  ;;  %v313_v14 = vld [vmem:[%s468_s2] ss:$0 sm:$0xff]  ;;  %v215_v35 = vsub.s32 %v212_v27, %v214_v28 }
   0x6   :  { %346 = vmatpush3.bf16.msra.mxu0 %v375_v2  ;;  %v317_v29 = vld [vmem:[%s470_s4] ss:$0 sm:$0xff] }
   0x8   :  { %354 = vmatpush3.bf16.msra.mxu1 %v377_v7 }
   0x9   :  { %348 = vmatmul.mubr.msk.bf16.vlgmr.msra.gmra.mrb[0].mxu0 %vm47_vm1, %v23_v6  ;;  %355 = vmatprep.subr.bf16.mxu1 %v388_v1 }
   0xc   :  { %356 = vmatpush3.bf16.msra.mxu1 %v378_v8 }
   0xd   :  { %357 = vmatprep.subr.bf16.mxu1 %v388_v1 }
  0x10   :  { %358 = vmatpush3.bf16.msra.mxu1 %v379_v9 }
  0x11   :  { %359 = vmatprep.subr.bf16.mxu1 %v388_v1 }
  0x14   :  { %360 = vmatpush3.bf16.msra.mxu1 %v380_v10 }
  0x15   :  { %361 = vmatprep.subr.bf16.mxu1 %v388_v1 }
  0x18   :  { %362 = vmatpush3.bf16.msra.mxu1 %v381_v11 }
  0x19   :  { %363 = vmatprep.subr.bf16.mxu1 %v388_v1 }
  0x1c   :  { %364 = vmatpush3.bf16.msra.mxu1 %v382_v12 }
  0x1d   :  { %365 = vmatprep.subr.bf16.mxu1 %v388_v1 }
  0x20   :  { %366 = vmatpush3.bf16.msra.mxu1 %v383_v13 }
  0xdc   :  { %v85_v15 = vpop.f32.mrb[0].mxu0 }
  0xdd   :  { %v86_v16 = vadd.f32 %v313_v14, %v85_v15  ;;  %v349_v17 = vpop.f32.mrb[1].mxu0 }
  0xde   :  { %v88_v18 = vpop.f32.mrb[2].mxu0 }
  0xdf   :  { %v89_v19 = vadd.f32 %v313_v14, %v88_v18  ;;  %v350_v20 = vpop.f32.mrb[3].mxu0  ;;  %384 = vtanh.f32 %v86_v16 }
  0xe1   :  { %386 = vtanh.f32 %v89_v19 }
  0xe9   :  { %v385_v21 = vpop.eup %384 }
  0xeb   :  { %v387_v22 = vpop.eup %386 }
  0xec   :  { %v94_v23 = vpack.c.bf16 %v387_v22, %v385_v21 }
  0xee   :  { %368 = vmatmul.mubr.bf16.vlgmr.msra.gmra.mrb[0].mxu1 %v94_v23 }
 0x1c1   :  { %v200_v30 = vpop.f32.mrb[0].mxu1 }
 0x1c2   :  { %v369_v31 = vpop.f32.mrb[1].mxu1  ;;  %v201_v33 = vadd.f32 %v317_v29, %v200_v30 }
 0x1c3   :  { %v203_v32 = vpop.f32.mrb[2].mxu1 }
 0x1c4   :  { %v204_v34 = vadd.f32 %v317_v29, %v203_v32  ;;  %v370_v36 = vpop.f32.mrb[3].mxu1 }
 0x1c6   :  { %v207_v37 = vpack.c.bf16 %v204_v34, %v201_v33 }
 0x1c8   :  { %v216_v38 = vrot.slane %v207_v37, %v215_v35 }
 0x1ca   :  { %327 = vst.sshfl [vmem:[#allocation2] sm:$0x1 pattern:$0x73625140] %v216_v38 }
 0x1d1   :  { %v291_v39 = vld [vmem:[#allocation2] sm:$0x1] }
 0x1d2   :  { %292 = vst [vmem:[%s471_s5] sm:$0x1] %v291_v39 }

</bundles_post_ra>
